<compile_context>
chip_gen: v6e
topology: v6e:2x2x1
jax: 0.10.0
libtpu: 0.0.40
codegen_flags: <defaults>
</compile_context>

<pallas_src>
import functools

import jax
import jax.numpy as jnp
from jax.experimental import pallas as pl
from jax.experimental.pallas import tpu as pltpu


# ----------------------------------------------------------------------------
# Kernel 1: fused (temporal mean + ROIAlign + MaxPool2d(resolution)) per box.
#   fsum = sum_T feat[batch_idx[b]]              (VPU, f32 accumulation)
#   vals = W[b] @ fsum              -> (RR, C)   (MXU, K = HW; 1/(count*T) folded into W)
#   out  = max over RR bins         -> (1, C)    (MaxPool over the full R x R window)
# ----------------------------------------------------------------------------
def _roi_pool_kernel(bidx_ref, w_ref, f_ref, o_ref):
    del bidx_ref  # only used by the index_maps
    # Temporal reduction (AvgPool3d over T); accumulate in f32 (v5e has no bf16 VALU).
    fsum = jnp.sum(f_ref[0].astype(jnp.float32), axis=0)                # (HW, C) f32
    # ROIAlign bilinear interpolation as one small matmul; W is f32 and carries 1/(count*T).
    vals = jnp.dot(w_ref[0], fsum, preferred_element_type=jnp.float32)  # (RR, C) f32
    # MaxPool2d(resolution) over the full R x R window == max over the RR bins.
    o_ref[0] = jnp.max(vals, axis=0, keepdims=True).astype(o_ref.dtype)  # (1, C) bf16


def roi_align_maxpool(feat, wmat, batch_idx):
    # feat:      (N, T, HW, C) bf16  (C on lanes)
    # wmat:      (B, RR, HW)   f32   (1/count and 1/T folded in; boxes sorted by batch_idx)
    # batch_idx: (B,) int32          (sorted -> consecutive steps reuse the feature block)
    N, T, HW, C = feat.shape
    B, RR, _ = wmat.shape
    out = pl.pallas_call(
        _roi_pool_kernel,
        out_shape=jax.ShapeDtypeStruct((B, 1, C), jnp.bfloat16),
        grid_spec=pltpu.PrefetchScalarGridSpec(
            num_scalar_prefetch=1,
            grid=(B,),
            in_specs=[
                pl.BlockSpec((1, RR, HW), lambda b, bidx: (b, 0, 0)),
                # data-dependent image fetch via scalar prefetch; identical consecutive
                # block indices (sorted boxes) -> the pipeline skips the feature re-DMA.
                pl.BlockSpec((1, T, HW, C), lambda b, bidx: (bidx[b], 0, 0, 0)),
            ],
            out_specs=pl.BlockSpec((1, 1, C), lambda b, bidx: (b, 0, 0)),
        ),
        compiler_params=pltpu.CompilerParams(dimension_semantics=("parallel",)),
    )(batch_idx, wmat, feat)
    return out[:, 0, :]                                                  # (B, C) bf16


# ----------------------------------------------------------------------------
# Kernel 2: projection (Linear over the concatenated pathway channels, done as a sum of
# per-pathway matmuls so no XLA concat is needed; classes padded to 128 lanes) + softmax.
# ----------------------------------------------------------------------------
def _make_proj_kernel(n_path):
    def kernel(*refs):
        xs = refs[:n_path]
        ws = refs[n_path:2 * n_path]
        b_ref = refs[2 * n_path]
        o_ref = refs[2 * n_path + 1]
        logits = b_ref[...]                                   # (1, Kp) f32, broadcasts
        for x_ref, w_ref in zip(xs, ws):
            logits = logits + jnp.dot(
                x_ref[...], w_ref[...], preferred_element_type=jnp.float32)
        m = jnp.max(logits, axis=-1, keepdims=True)
        e = jnp.exp(logits - m)
        # exact divide (one scalar per row) for parity with torch softmax
        o_ref[...] = e / jnp.sum(e, axis=-1, keepdims=True)
    return kernel


def project_softmax(xs, w_parts, bias_pad_row, num_classes):
    # xs:       list of (B, C_p) bf16 pooled outputs (one per pathway)
    # w_parts:  list of (C_p, Kp) bf16 weight slices (classes padded to Kp lanes)
    # bias_pad_row: (1, Kp) f32 with -1e30 on the padded classes
    n = len(xs)
    B = xs[0].shape[0]
    Kp = bias_pad_row.shape[1]
    in_specs = (
        [pl.BlockSpec(x.shape, lambda i: (0, 0)) for x in xs]
        + [pl.BlockSpec(w.shape, lambda i: (0, 0)) for w in w_parts]
        + [pl.BlockSpec((1, Kp), lambda i: (0, 0))]
    )
    out = pl.pallas_call(
        _make_proj_kernel(n),
        out_shape=jax.ShapeDtypeStruct((B, Kp), jnp.float32),
        grid=(1,),
        in_specs=in_specs,
        out_specs=pl.BlockSpec((B, Kp), lambda i: (0, 0)),
    )(*xs, *w_parts, bias_pad_row)
    return out[:, :num_classes]


# ----------------------------------------------------------------------------
# JAX glue: ROIAlign bilinear-interpolation weights (aligned=True, sampling_ratio=0),
# built via scatter-add (no dense one-hot).  Semantics follow torchvision/detectron2.
# ----------------------------------------------------------------------------
def roi_align_weights(boxes, H, W, R, spatial_scale, aligned=True, max_grid=None):
    B = boxes.shape[0]
    f32 = jnp.float32
    if max_grid is None:
        # sampling_ratio == 0 -> grid = ceil(roi_size / R).  For boxes inside the image
        # roi_size <= max(H, W); +1 margin covers slightly out-of-bound boxes.
        max_grid = -(-max(H, W) // R) + 1

    offset = 0.5 if aligned else 0.0
    x1 = boxes[:, 1] * spatial_scale - offset
    y1 = boxes[:, 2] * spatial_scale - offset
    x2 = boxes[:, 3] * spatial_scale - offset
    y2 = boxes[:, 4] * spatial_scale - offset
    roi_w = x2 - x1
    roi_h = y2 - y1
    if not aligned:
        roi_w = jnp.maximum(roi_w, 1.0)
        roi_h = jnp.maximum(roi_h, 1.0)

    bin_w = roi_w / R
    bin_h = roi_h / R
    grid_h = jnp.maximum(jnp.ceil(roi_h / R), 1.0)   # sampling_ratio == 0
    grid_w = jnp.maximum(jnp.ceil(roi_w / R), 1.0)
    count = grid_h * grid_w

    def e(v):  # (B,) -> (B,1,1,1,1)
        return v[:, None, None, None, None]

    ph = jnp.arange(R, dtype=f32)[None, :, None, None, None]
    pw = jnp.arange(R, dtype=f32)[None, None, :, None, None]
    gy = jnp.arange(max_grid, dtype=f32)[None, None, None, :, None]
    gx = jnp.arange(max_grid, dtype=f32)[None, None, None, None, :]

    y = e(y1) + ph * e(bin_h) + (gy + 0.5) * e(bin_h) / e(grid_h)
    x = e(x1) + pw * e(bin_w) + (gx + 0.5) * e(bin_w) / e(grid_w)
    valid = (gy < e(grid_h)) & (gx < e(grid_w))
    oob = (y < -1.0) | (y > H) | (x < -1.0) | (x > W)

    yc = jnp.maximum(y, 0.0)
    xc = jnp.maximum(x, 0.0)
    y_low = jnp.floor(yc).astype(jnp.int32)
    x_low = jnp.floor(xc).astype(jnp.int32)
    y_top = y_low >= H - 1
    x_top = x_low >= W - 1
    y_low = jnp.where(y_top, H - 1, y_low)
    x_low = jnp.where(x_top, W - 1, x_low)
    y_high = jnp.where(y_top, H - 1, y_low + 1)
    x_high = jnp.where(x_top, W - 1, x_low + 1)
    yc = jnp.where(y_top, y_low.astype(f32), yc)
    xc = jnp.where(x_top, x_low.astype(f32), xc)

    ly = yc - y_low.astype(f32)
    lx = xc - x_low.astype(f32)
    hy = 1.0 - ly
    hx = 1.0 - lx

    ws = jnp.stack([hy * hx, hy * lx, ly * hx, ly * lx], axis=-1)          # (B,R,R,G,G,4)
    idxs = jnp.stack(
        [y_low * W + x_low, y_low * W + x_high, y_high * W + x_low, y_high * W + x_high],
        axis=-1,
    )                                                                       # (B,R,R,G,G,4)

    scale = jnp.where(valid & (~oob), 1.0, 0.0) / e(count)
    ws = ws * scale[..., None]

    # scatter-add into (B, R*R, H*W): no dense one-hot intermediate.
    shape = ws.shape
    b_idx = jnp.broadcast_to(
        jnp.arange(B)[:, None, None, None, None, None], shape).reshape(-1)
    p2 = jnp.arange(R)[:, None] * R + jnp.arange(R)[None, :]                # (R, R)
    p_idx = jnp.broadcast_to(p2[None, :, :, None, None, None], shape).reshape(-1)
    wmat = jnp.zeros((B, R * R, H * W), f32).at[
        b_idx, p_idx, idxs.reshape(-1)].add(ws.reshape(-1))
    return wmat                                                             # (B, RR, HW) f32


# ----------------------------------------------------------------------------
# ResNetRoIHead forward
# ----------------------------------------------------------------------------
def resnet_roi_head_forward(inputs, bboxes, params, resolution, scale_factor,
                            extract=False):
    batch_idx = bboxes[:, 0].astype(jnp.int32)
    # Sort boxes by image so consecutive grid steps hit the same feature block (no re-DMA);
    # results are un-permuted back to the original box order at the end.
    order = jnp.argsort(batch_idx)
    inv_order = jnp.argsort(order)
    bboxes_s = bboxes[order]
    batch_idx_s = batch_idx[order]

    pool_out = []
    for pathway, feat in enumerate(inputs):
        N, C, T, H, W = feat.shape
        # bf16 cast BEFORE the layout transpose (halves its HBM traffic), then
        # (N,C,T,H,W) -> (N,T,HW,C): C on TPU lanes, HW is the contraction dim.
        f = jnp.transpose(feat.astype(jnp.bfloat16), (0, 2, 3, 4, 1)).reshape(
            N, T, H * W, C)

        R = resolution[pathway][0]
        wmat = roi_align_weights(
            bboxes_s, H, W, R, 1.0 / scale_factor[pathway], aligned=True)   # (B,RR,HW) f32
        # Fold the AvgPool3d([T,1,1]) mean into the (f32) interpolation weights; the kernel
        # does the sum over T, so only the 1/T scale is needed here (no T-tiling of W).
        wmat = wmat / T

        pool_out.append(roi_align_maxpool(f, wmat, batch_idx_s))            # (B, C) bf16

    if extract:
        return jnp.concatenate(pool_out, axis=1)[inv_order]                 # (B, sum(dim_in))

    # TODO(synk): dropout not implemented (dropout_rate == 0.0 -> inference path).
    probs_s = project_softmax(
        pool_out, params["w_t_parts"], params["b"], params["num_classes"])  # (B, num_classes)
    return probs_s[inv_order]


if __name__ == "__main__":
    # Small, deterministic config consistent with the module (2 pathways, SlowFast-style).
    dim_in = [16, 8]
    pool_size = [[4, 1, 1], [8, 1, 1]]       # temporal pool kernels (= T per pathway)
    resolution = [[5, 5], [5, 5]]
    scale_factor = [16, 16]
    num_classes = 10
    N, H, W = 2, 8, 8
    num_boxes = 6

    key = jax.random.PRNGKey(0)
    k0, k1, kw, kb = jax.random.split(key, 4)

    inputs = [
        jax.random.normal(k0, (N, dim_in[0], pool_size[0][0], H, W), dtype=jnp.float32),
        jax.random.normal(k1, (N, dim_in[1], pool_size[1][0], H, W), dtype=jnp.float32),
    ]
    # (batch_idx, x1, y1, x2, y2) in input-image coordinates (~ H*scale_factor = 128).
    # Deliberately NOT sorted by batch_idx to exercise the sort/un-permute path.
    bboxes = jnp.array(
        [
            [1.0, 33.0, 40.0, 110.0, 120.0],
            [0.0, 8.0, 12.0, 96.0, 100.0],
            [1.0, 5.5, 10.25, 50.75, 90.0],
            [0.0, 20.0, 5.0, 70.0, 64.0],
            [0.0, 0.0, 0.0, 127.0, 127.0],
            [1.0, 60.0, 30.0, 100.0, 80.0],
        ],
        dtype=jnp.float32,
    )

    D = sum(dim_in)
    # Deterministic projection params (nn.Linear(sum(dim_in), num_classes)).
    proj_w = jax.random.normal(kw, (num_classes, D), dtype=jnp.float32) * 0.05
    proj_b = jax.random.normal(kb, (num_classes,), dtype=jnp.float32) * 0.05

    # Split the Linear weight per pathway (kills the XLA concat) and pad the class (lane)
    # dim to 128: zero weights, -1e30 bias -> padded softmax columns come out exactly 0.
    K_PAD = 128
    w_parts = []
    col = 0
    for c_p in dim_in:
        w_slice = proj_w[:, col:col + c_p].T                                 # (C_p, classes)
        w_pad = (
            jnp.zeros((c_p, K_PAD), jnp.float32).at[:, :num_classes].set(w_slice)
        ).astype(jnp.bfloat16)
        w_parts.append(w_pad)
        col += c_p
    b_pad = jnp.full((1, K_PAD), -1e30, jnp.float32).at[0, :num_classes].set(proj_b)
    params = {"w_t_parts": w_parts, "b": b_pad, "num_classes": num_classes}

    fwd = functools.partial(
        resnet_roi_head_forward,
        resolution=resolution,
        scale_factor=scale_factor,
        extract=False,
    )
    out = fwd(inputs, bboxes, params)
    out = jax.block_until_ready(out)

    assert out.shape == (num_boxes, num_classes)
    assert bool(jnp.all(jnp.isfinite(out)))
    # softmax rows sum to ~1 (exact f32 normalization; bf16 MXU operands upstream)
    assert bool(jnp.allclose(jnp.sum(out, axis=-1), 1.0, atol=1e-3))
    print("KERNEL_OK")
</pallas_src>

<mosaic_0001>
module attributes {stable_mosaic.version = 11 : i64} {
  func.func @_roi_pool_kernel(%arg0: i32, %arg1: memref<6xi32, #tpu.memory_space<smem>>, %arg2: memref<1x25x64xf32, #tpu.memory_space<vmem>>, %arg3: memref<1x4x64x16xbf16, #tpu.memory_space<vmem>>, %arg4: memref<1x1x16xbf16, #tpu.memory_space<vmem>>) attributes {dimension_semantics = [#tpu.dimension_semantics<parallel>], iteration_bounds = array<i64: 6>, scalar_prefetch = 1 : i64, scratch_operands = 0 : i64, tpu.core_type = #tpu.core_type<tc>, window_params = [{transform_indices = @transform_0, window_bounds = array<i64: 1, 25, 64>}, {transform_indices = @transform_1, window_bounds = array<i64: 1, 4, 64, 16>}, {transform_indices = @transform_2, window_bounds = array<i64: 1, 1, 16>}]} {
    %c0 = arith.constant 0 : index
    %c0_0 = arith.constant 0 : index
    %c0_1 = arith.constant 0 : index
    %c0_2 = arith.constant 0 : index
    %0 = vector.load %arg3[%c0, %c0_0, %c0_1, %c0_2] : memref<1x4x64x16xbf16, #tpu.memory_space<vmem>>, vector<1x4x64x16xbf16>
    %1 = vector.shape_cast %0 : vector<1x4x64x16xbf16> to vector<4x64x16xbf16>
    %2 = arith.extf %1 : vector<4x64x16xbf16> to vector<4x64x16xf32>
    %cst = arith.constant dense<0.000000e+00> : vector<64x16xf32>
    %3 = vector.multi_reduction <add>, %2, %cst [0] : vector<4x64x16xf32> to vector<64x16xf32>
    %c0_3 = arith.constant 0 : index
    %c0_4 = arith.constant 0 : index
    %c0_5 = arith.constant 0 : index
    %4 = vector.load %arg2[%c0_3, %c0_4, %c0_5] : memref<1x25x64xf32, #tpu.memory_space<vmem>>, vector<1x25x64xf32>
    %5 = vector.shape_cast %4 : vector<1x25x64xf32> to vector<25x64xf32>
    %cst_6 = arith.constant dense<0.000000e+00> : vector<25x16xf32>
    %6 = tpu.matmul %5, %3, %cst_6 {dimension_numbers = #tpu.dot_dimension_numbers<[1], [0], [0], [1], [0, 0, 1, 1], [], []>} : vector<25x64xf32>, vector<64x16xf32>, vector<25x16xf32> -> vector<25x16xf32>
    %cst_7 = arith.constant dense<0xFF800000> : vector<16xf32>
    %7 = vector.multi_reduction <maximumf>, %6, %cst_7 [0] : vector<25x16xf32> to vector<16xf32>
    %8 = vector.shape_cast %7 : vector<16xf32> to vector<1x16xf32>
    %9 = arith.truncf %8 : vector<1x16xf32> to vector<1x16xbf16>
    %c0_8 = arith.constant 0 : index
    %c0_9 = arith.constant 0 : index
    %c0_10 = arith.constant 0 : index
    %10 = vector.load %arg4[%c0_8, %c0_9, %c0_10] : memref<1x1x16xbf16, #tpu.memory_space<vmem>>, vector<1x1x16xbf16>
    %11 = vector.shape_cast %10 : vector<1x1x16xbf16> to vector<1x16xbf16>
    %12 = vector.shape_cast %9 : vector<1x16xbf16> to vector<1x1x16xbf16>
    tpu.vector_store %arg4[%c0_8, %c0_9, %c0_10], %12 {strides = array<i32>} : memref<1x1x16xbf16, #tpu.memory_space<vmem>>, vector<1x1x16xbf16>,
    return
  }
  func.func @transform_0(%arg0: i32, %arg1: memref<6xi32, #tpu.memory_space<smem>>) -> (i32, i32, i32) {
    %c0_i32 = arith.constant 0 : i32
    %c0_i32_0 = arith.constant 0 : i32
    %c0_i32_1 = arith.constant 0 : i32
    return %arg0, %c0_i32, %c0_i32_0 : i32, i32, i32
  }
  func.func @transform_1(%arg0: i32, %arg1: memref<6xi32, #tpu.memory_space<smem>>) -> (i32, i32, i32, i32) {
    %0 = arith.index_cast %arg0 : i32 to index
    %1 = memref.load %arg1[%0] : memref<6xi32, #tpu.memory_space<smem>>
    %c0_i32 = arith.constant 0 : i32
    %c0_i32_0 = arith.constant 0 : i32
    %c0_i32_1 = arith.constant 0 : i32
    %c0_i32_2 = arith.constant 0 : i32
    return %1, %c0_i32, %c0_i32_0, %c0_i32_1 : i32, i32, i32, i32
  }
  func.func @transform_2(%arg0: i32, %arg1: memref<6xi32, #tpu.memory_space<smem>>) -> (i32, i32, i32) {
    %c0_i32 = arith.constant 0 : i32
    %c0_i32_0 = arith.constant 0 : i32
    %c0_i32_1 = arith.constant 0 : i32
    return %arg0, %c0_i32, %c0_i32_0 : i32, i32, i32
  }
}

</mosaic_0001>

<bundles_post_ra>
// kernel: tpu_custom_call.1
= control target key start
LH: loop header
LB: loop body
LE: loop exit
PB: predicated region body
PF: predicated region fallthrough
CT: control target
= control target key end

     0   :  { %s767_s0 = inlined_call_operand.vmem [shape: s32[6], index: 0, kind: input, shape index: {}]   ;;  %s768_s1 = inlined_call_operand.vmem [shape: f32[6,25,64], index: 1, kind: input, shape index: {}]   ;;  %s769_s2 = inlined_call_operand.vmem [shape: bf16[2,4,64,16], index: 2, kind: input, shape index: {}]   ;;  %s770_s3 = inlined_call_operand.vmem [shape: bf16[6,1,16], index: 3, kind: output, shape index: {}]  }
   0x1   :  { %s8_s14 = sshll.u32 %s767_s0, 4  ;;  %s9_s14 = int_to_ptr.vmem [resolvable:$true] %s8_s14 }
   0x2   :  { %s632_s15 = scalar_lea.vmem %s9_s14, 16  ;;  %p637_p1 = scmp.lt.s32.totalorder %s9_s14, %s9_s14 }
   0x3   :  { %p633_p0 = scmp.ne.s32.totalorder %s9_s14, %s632_s15  ;;  %p638_p2 = scmp.lt.s32.totalorder %s632_s15, %s632_s15 }
   0x5   :  { %p639_p3 = por %p638_p2, %p637_p1 }
   0x7   :  { %p640_p4 = pnand %p639_p3, %p633_p0 }
   0x9   :  { %643 = shalt.err (!%p640_p4)  }
   0xa   :  { %s654_s16 = smov [#allocation3]  }
   0xb   :  { %11 = dma.vmem_to_smem %s9_s14, 16, %s654_s16, [#allocation2] }
   0xc   :  { %648 = dma.done.wait [#allocation2], 16 }
   0xd   :  { %649 = vsyncadd [#allocation2], 4294967280 }
   0xe   :  { %13 = sfence }
   0xf   :  { %s678_s17 = smov 0  }
  0x10 LB: > { %s477_s0 = sadd.s32 4294967295, %s652_s17   ;;  %p481_p5 = scmp.ge.s32.totalorder %s652_s17, 1  ;;  %s652_s17 = sphi %s678_s17, %s19_s17  }
  0x11   : > { %p133_p6 = scmp.lt.s32.totalorder %s652_s17, 7 }
  0x13   : > { %p134_p7 = pnand %p481_p5, %p133_p6 }
  0x14   : > { %s164_s18 = sld [smem:[#allocation3 + %s477_s0]] (!%p134_p7)  ;;  %p159_p8 = scmp.lt.s32.totalorder (!%p134_p7), %s477_s0, 5 }
  0x15   : > { %137 = sbr.rel (%p134_p7) target bundleno = 276 (0x114), region = 28 }
  0x1a   : > { %s772_s0 = smov (!%p159_p8, %s477_s0), 5  ;;  %vm299_vm0 = vcmask 523264   ;;  %p165_p9 = scmp.lt.s32.totalorder %s164_s18, 1  ;;  %vm238_vm1 = vcmask 130048   ;;  %vm400_vm2 = vcmask 122880  }
  0x1b   : > { %s492_s19 = sshll.u32 %s772_s0, 5  ;;  %s173_s29 = scalar_lea.vmem %s770_s3, %s772_s0  ;;  %vm413_vm3 = vsmask.f32 256 }
  0x1c   : > { %s692_s22 = scalar_lea.vmem %s768_s1, %s492_s19  ;;  %s774_s18 = smov (!%p165_p9, %s164_s18), 1  ;;  %vm414_vm4 = vmand %vm400_vm2, %vm413_vm3 }
  0x1d   : > { %v295_v0 = vld [vmem:[%s692_s22] sm:$0xff]  ;;  %v297_v1 = vld [vmem:[%s692_s22 + $0x10] sm:$0xff]  ;;  %s493_s23 = sshll.u32 %s774_s18, 7 }
  0x1e   : > { %601 = vmatprep.mubr.msk.f32.mxu0 %vm299_vm0, %v295_v0  ;;  %604 = vmatprep.mubr.msk.f32.mxu1 %vm299_vm0, %v297_v1  ;;  %s701_s26 = scalar_lea.vmem %s769_s2, %s493_s23 }
  0x1f   : > { %v560_v2 = vld [vmem:[%s701_s26 + $0x18] sm:$0xff]   ;;  %v559_v14 = vld [vmem:[%s701_s26 + $0x10] sm:$0xff]   ;;  %v558_v38 = vld [vmem:[%s701_s26 + $0x8] sm:$0xff]  }
  0x20   : > { %v564_v3 = vld [vmem:[%s701_s26 + $0x38] sm:$0xff]   ;;  %v509_v5 = vunpack.c.h.bf16 %v560_v2  ;;  %v508_v9 = vunpack.c.l.bf16 %v560_v2  ;;  %v563_v15 = vld [vmem:[%s701_s26 + $0x30] sm:$0xff]   ;;  %v505_v28 = vunpack.c.h.bf16 %v559_v14  ;;  %v504_v33 = vunpack.c.l.bf16 %v559_v14  ;;  %v562_v39 = vld [vmem:[%s701_s26 + $0x28] sm:$0xff]  }
  0x21   : > { %v568_v4 = vld [vmem:[%s701_s26 + $0x58] sm:$0xff]   ;;  %v525_v6 = vunpack.c.h.bf16 %v564_v3  ;;  %v524_v11 = vunpack.c.l.bf16 %v564_v3  ;;  %v567_v20 = vld [vmem:[%s701_s26 + $0x50] sm:$0xff]   ;;  %v521_v29 = vunpack.c.h.bf16 %v563_v15  ;;  %v520_v37 = vunpack.c.l.bf16 %v563_v15  ;;  %v566_v44 = vld [vmem:[%s701_s26 + $0x48] sm:$0xff]  }
  0x22   : > { %v541_v7 = vunpack.c.h.bf16 %v568_v4  ;;  %v572_v8 = vld [vmem:[%s701_s26 + $0x78] sm:$0xff]   ;;  %v540_v12 = vunpack.c.l.bf16 %v568_v4  ;;  %v288_v16 = vsel %vm238_vm1, %v509_v5, 0.0  ;;  %v281_v19 = vsel %vm238_vm1, %v508_v9, 0.0  ;;  %v571_v21 = vld [vmem:[%s701_s26 + $0x70] sm:$0xff]   ;;  %v570_v49 = vld [vmem:[%s701_s26 + $0x68] sm:$0xff]  }
  0x23   : > { %v557_v10 = vunpack.c.h.bf16 %v572_v8  ;;  %v556_v13 = vunpack.c.l.bf16 %v572_v8  ;;  %v289_v17 = vsel %vm238_vm1, %v525_v6, 0.0  ;;  %v282_v24 = vsel %vm238_vm1, %v524_v11, 0.0  ;;  %v495_v62 = vld [vmem:[%s701_s26] sm:$0xff]  }
  0x24   : > { %v291_v18 = vsel %vm238_vm1, %v541_v7, 0.0  ;;  %v290_v22 = vadd.f32 %v289_v17, %v288_v16  ;;  %v284_v25 = vsel %vm238_vm1, %v540_v12, 0.0  ;;  %v283_v26 = vadd.f32 %v282_v24, %v281_v19  ;;  %v561_v3 = vld [vmem:[%s701_s26 + $0x20] sm:$0xff]  }
  0x25   : > { %v293_v23 = vsel %vm238_vm1, %v557_v10, 0.0  ;;  %v286_v27 = vsel %vm238_vm1, %v556_v13, 0.0  ;;  %v537_v31 = vunpack.c.h.bf16 %v567_v20  ;;  %v553_v32 = vunpack.c.h.bf16 %v571_v21  ;;  %v565_v8 = vld [vmem:[%s701_s26 + $0x40] sm:$0xff]  }
  0x26   : > { %v292_v30 = vadd.f32 %v291_v18, %v290_v22  ;;  %v285_v34 = vadd.f32 %v284_v25, %v283_v26  ;;  %v274_v35 = vsel %vm238_vm1, %v505_v28, 0.0  ;;  %v275_v36 = vsel %vm238_vm1, %v521_v29, 0.0  ;;  %v569_v9 = vld [vmem:[%s701_s26 + $0x60] sm:$0xff]  }
  0x27   : > { %v276_v41 = vadd.f32 %v275_v36, %v274_v35  ;;  %v277_v42 = vsel %vm238_vm1, %v537_v31, 0.0  ;;  %v279_v43 = vsel %vm238_vm1, %v553_v32, 0.0  ;;  %v536_v46 = vunpack.c.l.bf16 %v567_v20 }
  0x28   : > { %v294_v40 = vadd.f32 %v293_v23, %v292_v30  ;;  %v287_v45 = vadd.f32 %v286_v27, %v285_v34  ;;  %v552_v47 = vunpack.c.l.bf16 %v571_v21  ;;  %v267_v48 = vsel %vm238_vm1, %v504_v33, 0.0 }
  0x29   : > { %v278_v50 = vadd.f32 %v277_v42, %v276_v41  ;;  %v268_v51 = vsel %vm238_vm1, %v520_v37, 0.0  ;;  %v501_v52 = vunpack.c.h.bf16 %v558_v38  ;;  %v517_v53 = vunpack.c.h.bf16 %v562_v39  ;;  %v296_v42 = vld [vmem:[%s692_s22 + $0x8] sm:$0xff] }
  0x2a   : > { %585 = vmatprep.subr.mxu0 %v294_v40  ;;  %607 = vmatprep.subr.mxu1 %v294_v40  ;;  %v269_v54 = vadd.f32 %v268_v51, %v267_v48  ;;  %v270_v55 = vsel %vm238_vm1, %v536_v46, 0.0  ;;  %v272_v56 = vsel %vm238_vm1, %v552_v47, 0.0  ;;  %v533_v57 = vunpack.c.h.bf16 %v566_v44 }
  0x2b   : > { %586 = vmatpush3.msra.mxu0 %v294_v40  ;;  %615 = vmatpush3.msra.mxu1 %v294_v40  ;;  %v280_v58 = vadd.f32 %v279_v43, %v278_v50  ;;  %v549_v59 = vunpack.c.h.bf16 %v570_v49  ;;  %v260_v60 = vsel %vm238_vm1, %v501_v52, 0.0  ;;  %v261_v61 = vsel %vm238_vm1, %v517_v53, 0.0  ;;  %v298_v43 = vld [vmem:[%s692_s22 + $0x18] sm:$0x1] }
  0x2c   : > { %587 = vmatprep.subr.mxu0 %v287_v45  ;;  %608 = vmatprep.subr.mxu1 %v287_v45  ;;  %v271_v63 = vadd.f32 %v270_v55, %v269_v54  ;;  %v262_v0 = vadd.f32 %v261_v61, %v260_v60  ;;  %v263_v1 = vsel %vm238_vm1, %v533_v57, 0.0  ;;  %v500_v2 = vunpack.c.l.bf16 %v558_v38  ;;  %v415_v61 = vld [vmem:[%s173_s29] sm:$0x1] }
  0x2d   : > { %588 = vmatpush3.msra.mxu0 %v287_v45  ;;  %616 = vmatpush3.msra.mxu1 %v287_v45  ;;  %v265_v4 = vsel %vm238_vm1, %v549_v59, 0.0  ;;  %v516_v5 = vunpack.c.l.bf16 %v562_v39  ;;  %v532_v6 = vunpack.c.l.bf16 %v566_v44  ;;  %v548_v7 = vunpack.c.l.bf16 %v570_v49 }
  0x2e   : > { %589 = vmatprep.subr.mxu0 %v280_v58  ;;  %609 = vmatprep.subr.mxu1 %v280_v58  ;;  %v273_v10 = vadd.f32 %v272_v56, %v271_v63  ;;  %v264_v11 = vadd.f32 %v263_v1, %v262_v0  ;;  %v253_v12 = vsel %vm238_vm1, %v500_v2, 0.0  ;;  %v497_v13 = vunpack.c.h.bf16 %v495_v62 }
  0x2f   : > { %590 = vmatpush3.msra.mxu0 %v280_v58  ;;  %617 = vmatpush3.msra.mxu1 %v280_v58  ;;  %v254_v14 = vsel %vm238_vm1, %v516_v5, 0.0  ;;  %v256_v15 = vsel %vm238_vm1, %v532_v6, 0.0  ;;  %v258_v16 = vsel %vm238_vm1, %v548_v7, 0.0  ;;  %v513_v17 = vunpack.c.h.bf16 %v561_v3 }
  0x30   : > { %591 = vmatprep.subr.mxu0 %v273_v10  ;;  %610 = vmatprep.subr.mxu1 %v273_v10  ;;  %v266_v18 = vadd.f32 %v265_v4, %v264_v11  ;;  %v255_v19 = vadd.f32 %v254_v14, %v253_v12  ;;  %v529_v20 = vunpack.c.h.bf16 %v565_v8  ;;  %v545_v21 = vunpack.c.h.bf16 %v569_v9 }
  0x31   : > { %592 = vmatpush3.msra.mxu0 %v273_v10  ;;  %618 = vmatpush3.msra.mxu1 %v273_v10  ;;  %v246_v22 = vsel %vm238_vm1, %v497_v13, 0.0  ;;  %v247_v23 = vsel %vm238_vm1, %v513_v17, 0.0  ;;  %v496_v24 = vunpack.c.l.bf16 %v495_v62  ;;  %v512_v25 = vunpack.c.l.bf16 %v561_v3 }
  0x32   : > { %593 = vmatprep.subr.mxu0 %v266_v18  ;;  %611 = vmatprep.subr.mxu1 %v266_v18  ;;  %v257_v26 = vadd.f32 %v256_v15, %v255_v19  ;;  %v248_v27 = vadd.f32 %v247_v23, %v246_v22  ;;  %v249_v28 = vsel %vm238_vm1, %v529_v20, 0.0  ;;  %v251_v29 = vsel %vm238_vm1, %v545_v21, 0.0 }
  0x33   : > { %594 = vmatpush3.msra.mxu0 %v266_v18  ;;  %619 = vmatpush3.msra.mxu1 %v266_v18  ;;  %v528_v30 = vunpack.c.l.bf16 %v565_v8  ;;  %v544_v31 = vunpack.c.l.bf16 %v569_v9  ;;  %v239_v32 = vsel %vm238_vm1, %v496_v24, 0.0  ;;  %v240_v33 = vsel %vm238_vm1, %v512_v25, 0.0 }
  0x34   : > { %v259_v34 = vadd.f32 %v258_v16, %v257_v26  ;;  %v250_v35 = vadd.f32 %v249_v28, %v248_v27  ;;  %v241_v36 = vadd.f32 %v240_v33, %v239_v32 }
  0x35   : > { %v242_v37 = vsel %vm238_vm1, %v528_v30, 0.0  ;;  %v244_v38 = vsel %vm238_vm1, %v544_v31, 0.0 }
  0x36   : > { %595 = vmatprep.subr.mxu0 %v259_v34  ;;  %612 = vmatprep.subr.mxu1 %v259_v34  ;;  %v252_v39 = vadd.f32 %v251_v29, %v250_v35  ;;  %v243_v40 = vadd.f32 %v242_v37, %v241_v36 }
  0x37   : > { %596 = vmatpush3.msra.mxu0 %v259_v34  ;;  %620 = vmatpush3.msra.mxu1 %v259_v34 }
  0x38   : > { %597 = vmatprep.subr.mxu0 %v252_v39  ;;  %613 = vmatprep.subr.mxu1 %v252_v39  ;;  %v245_v41 = vadd.f32 %v244_v38, %v243_v40 }
  0x39   : > { %598 = vmatpush3.msra.mxu0 %v252_v39  ;;  %621 = vmatpush3.msra.mxu1 %v252_v39 }
  0x3a   : > { %599 = vmatprep.subr.mxu0 %v245_v41  ;;  %614 = vmatprep.subr.mxu1 %v245_v41 }
  0x3b   : > { %600 = vmatpush3.msra.mxu0 %v245_v41  ;;  %622 = vmatpush3.msra.mxu1 %v245_v41 }
  0x3c   : > { %602 = vmatmul.mubr.msk.f32.vlgmr.msra.gmra.mxu0 %vm299_vm0, %v296_v42  ;;  %605 = vmatmul.mubr.msk.f32.vlgmr.msra.gmra.mxu1 %vm299_vm0, %v298_v43 }
  0xfc   : > { %v603_v44 = vpop.f32.mrf.mxu0  ;;  %v606_v45 = vpop.f32.mrf.mxu1 }
  0xfd   : > { %v398_v48 = vsel %vm238_vm1, %v603_v44, -inf  ;;  %v401_v49 = vsel %vm400_vm2, %v606_v45, -inf }
  0xfe   : > { %v378_v46 = vpop.f32.mrf.mxu0  ;;  %v388_v47 = vpop.f32.mrf.mxu1 }
  0xff   : > { %v397_v50 = vsel %vm238_vm1, %v378_v46, -inf  ;;  %v399_v51 = vsel %vm238_vm1, %v388_v47, -inf }
 0x100   : > { %v402_v52 = vmax.f32 %v397_v50, %v398_v48  ;;  %v403_v53 = vmax.f32 %v399_v51, %v401_v49 }
 0x102   : > { %v404_v54 = vmax.f32 %v402_v52, %v403_v53 }
 0x104   : > { %v405_v55 = vrot.slane %v404_v54, 4 }
 0x106   : > { %v406_v56 = vmax.f32 %v404_v54, %v405_v55 }
 0x108   : > { %v407_v57 = vrot.slane %v406_v56, 2 }
 0x10a   : > { %v408_v58 = vmax.f32 %v406_v56, %v407_v57 }
 0x10c   : > { %v409_v59 = vrot.slane %v408_v58, 1 }
 0x10e   : > { %v410_v60 = vmax.f32 %v408_v58, %v409_v59 }
 0x110   : > { %v411_v62 = vpack.c.bf16 %v410_v60, %v410_v60 }
 0x112   : > { %v416_v63 = vsel %vm414_vm4, %v411_v62, %v415_v61 }
 0x113   : > { %417 = vst [vmem:[%s173_s29] sm:$0x1] %v416_v63 }
 0x114 PF: > { %s19_s17 = sadd.s32 1, %s652_s17  }
 0x115   : > { %p16_p10 = scmp.ge.s32.totalorder %s19_s17, 8  }
 0x117   :  { %18 = sbr.rel (!%p16_p10) target bundleno = 16 (0x10), region = 61 }

</bundles_post_ra>
